<compile_context>
chip_gen: v7x
topology: tpu7x:2x2x1
jax: 0.10.0
libtpu: 0.0.40
codegen_flags: <defaults>
</compile_context>

<pallas_src>
import functools

import jax
import jax.numpy as jnp
from jax.experimental import pallas as pl
from jax.experimental.pallas import tpu as pltpu


def _avg_attn_kernel(emit_avg,
                     x_ref, gamma_ref, beta_ref,
                     w1_ref, b1_ref, w2_ref, b2_ref,
                     wgx_in_ref, wga_in_ref, wgx_fg_ref, wga_fg_ref,
                     bg_in_ref, bg_fg_ref,
                     *rest):
    """One (batch, seq-tile) block per grid step.

    x_ref        : [1, T, D] input tile
    gamma/beta   : [1, D]    LayerNorm affine (f32, eps = 1e-6)
    w1, w2       : [D, D]    FFN weights (bf16); b1, b2: [1, D] f32
    wg{x,a}_{in,fg}: [D, D]  gating weight split into 4 blocks (bf16)
    bg_in, bg_fg : [1, D]    gating bias halves (f32)
    outputs      : gating_outputs [1,T,D] (+ optional average_outputs [1,T,D])
    scratch      : carry [1, D] f32 running row-sum;  tri [T, T] bf16 mask
    """
    if emit_avg:
        gate_out_ref, avg_out_ref, carry_ref, tri_ref = rest
    else:
        gate_out_ref, carry_ref, tri_ref = rest
        avg_out_ref = None

    t = pl.program_id(1)
    _, T, D = x_ref.shape

    @pl.when(t == 0)
    def _():
        carry_ref[...] = jnp.zeros_like(carry_ref)
        # Hoisted triangular mask: built once per batch, reused for all tiles.
        row = jax.lax.broadcasted_iota(jnp.int32, (T, T), 0)
        col = jax.lax.broadcasted_iota(jnp.int32, (T, T), 1)
        tri_ref[...] = (col <= row).astype(tri_ref.dtype)

    x = x_ref[0].astype(jnp.float32)                        # [T, D]
    x_bf = x_ref[0].astype(jnp.bfloat16)

    # ---- cumulative average (Eq. 1): bf16 tri-matmul + carried row-sum -----
    csum = jnp.dot(tri_ref[...], x_bf,
                   preferred_element_type=jnp.float32)      # [T, D], f32 acc
    csum = csum + carry_ref[...]                            # + sum of prev tiles
    carry_ref[...] = csum[T - 1:T, :]                       # running sum

    pos = t * T + jax.lax.broadcasted_iota(jnp.int32, (T, 1), 0) + 1
    avg = csum * (1.0 / pos.astype(jnp.float32))            # [T, D]

    # ---- PositionwiseFeedForward(avg): LN -> W1 -> ReLU -> W2 -> +residual -
    mu = jnp.mean(avg, axis=-1, keepdims=True)
    var = jnp.mean((avg - mu) ** 2, axis=-1, keepdims=True)
    ln = (avg - mu) * jax.lax.rsqrt(var + 1e-6)
    ln = ln * gamma_ref[...] + beta_ref[...]
    h = jnp.dot(ln.astype(jnp.bfloat16), w1_ref[...],
                preferred_element_type=jnp.float32) + b1_ref[...]
    h = jnp.maximum(h, 0.0)
    ff = jnp.dot(h.astype(jnp.bfloat16), w2_ref[...],
                 preferred_element_type=jnp.float32) + b2_ref[...]
    avg_out = ff + avg                                      # [T, D]
    avg_bf = avg_out.astype(jnp.bfloat16)

    # ---- gating: two independent [T, D] gates (weight pre-split in wrapper) -
    ig = (jnp.dot(x_bf, wgx_in_ref[...], preferred_element_type=jnp.float32)
          + jnp.dot(avg_bf, wga_in_ref[...], preferred_element_type=jnp.float32)
          + bg_in_ref[...])
    fg = (jnp.dot(x_bf, wgx_fg_ref[...], preferred_element_type=jnp.float32)
          + jnp.dot(avg_bf, wga_fg_ref[...], preferred_element_type=jnp.float32)
          + bg_fg_ref[...])
    gated = jax.nn.sigmoid(ig) * x + jax.nn.sigmoid(fg) * avg_out

    gate_out_ref[0] = gated.astype(gate_out_ref.dtype)
    if avg_out_ref is not None:
        avg_out_ref[0] = avg_out.astype(avg_out_ref.dtype)


def prepare_params(params):
    """Pre-cast weights to bf16 and pre-split the gating weight (do ONCE)."""
    D = params["w1"].shape[0]
    wg = params["wg"]
    return {
        "_prepared": True,
        "gamma": params["ln_gamma"].reshape(1, D).astype(jnp.float32),
        "beta": params["ln_beta"].reshape(1, D).astype(jnp.float32),
        "w1": params["w1"].astype(jnp.bfloat16),
        "b1": params["b1"].reshape(1, D).astype(jnp.float32),
        "w2": params["w2"].astype(jnp.bfloat16),
        "b2": params["b2"].reshape(1, D).astype(jnp.float32),
        # concat(x, avg) @ Wg == x @ Wg[:D] + avg @ Wg[D:], split per gate half
        "wg_x_in": wg[:D, :D].astype(jnp.bfloat16),
        "wg_a_in": wg[D:, :D].astype(jnp.bfloat16),
        "wg_x_fg": wg[:D, D:].astype(jnp.bfloat16),
        "wg_a_fg": wg[D:, D:].astype(jnp.bfloat16),
        "bg_in": params["bg"][:D].reshape(1, D).astype(jnp.float32),
        "bg_fg": params["bg"][D:].reshape(1, D).astype(jnp.float32),
    }


def _default_block_rows():
    """128 on v5e (128-wide MXU, small scoped VMEM); 256 on v6e/v7x."""
    try:
        kind = jax.devices()[0].device_kind.lower()
    except Exception:
        return 256
    if "v5 lite" in kind or "v5e" in kind or "v5lite" in kind:
        return 128
    return 256


def _tile_and_pad(length, target):
    """Return (tile T, padded length).  Prefer a divisor of L; else pad L."""
    if length <= target:
        return length, length
    t = max((target // 8) * 8, 8)
    tt = t
    while tt >= 8:
        if length % tt == 0:
            return tt, length
        tt -= 8
    padded = pl.cdiv(length, t) * t
    return t, padded


def _vmem_limit_bytes(T, D, x_itemsize, out_itemsize, n_outputs):
    act = 2 * T * D * x_itemsize + n_outputs * 2 * T * D * out_itemsize  # dbl-buf
    weights = 6 * D * D * 2 + 8 * D * 4                    # bf16, single-buffered
    scratch = T * T * 2 + D * 4                             # tri + carry
    work = 8 * T * D * 4                                    # f32 intermediates
    need = act + weights + scratch + work
    return int(min(100 * (1 << 20), max(32 * (1 << 20), int(need * 1.5) + (4 << 20))))


def average_attention(inputs, params, *, block_rows=None, return_average=True):
    """Pallas forward of AverageAttention (inference; dropout = identity).

    inputs: [B, L, D] (f32 or bf16; outputs follow the input dtype)
    returns (gating_outputs, average_outputs) or just gating_outputs.
    """
    if not params.get("_prepared", False):
        params = prepare_params(params)
    B, L, D = inputs.shape
    if block_rows is None:
        block_rows = _default_block_rows()
    T, Lp = _tile_and_pad(L, block_rows)
    nt = Lp // T

    x = inputs if Lp == L else jnp.pad(inputs, ((0, 0), (0, Lp - L), (0, 0)))
    out_dtype = inputs.dtype
    x_bytes = jnp.dtype(inputs.dtype).itemsize
    out_bytes = jnp.dtype(out_dtype).itemsize
    n_out = 2 if return_average else 1

    # Constant (weight / bias) operands: index never changes -> single-buffer.
    const = lambda shape: pl.BlockSpec(shape, lambda b, t: (0, 0),
                                       pipeline_mode=pl.Buffered(1))
    act_spec = pl.BlockSpec((1, T, D), lambda b, t: (b, t, 0))

    out_shapes = [jax.ShapeDtypeStruct((B, Lp, D), out_dtype) for _ in range(n_out)]
    out_specs = [pl.BlockSpec((1, T, D), lambda b, t: (b, t, 0)) for _ in range(n_out)]

    weight_bytes = 6 * D * D * 2 + 8 * D * 4
    cost = pl.CostEstimate(
        flops=int(2 * B * Lp * (T * D + 6 * D * D)),
        transcendentals=int(3 * B * Lp * D),
        bytes_accessed=int(B * Lp * D * (x_bytes + n_out * out_bytes) + weight_bytes),
    )

    fn = pl.pallas_call(
        functools.partial(_avg_attn_kernel, return_average),
        out_shape=out_shapes,
        grid_spec=pltpu.PrefetchScalarGridSpec(
            num_scalar_prefetch=0,
            grid=(B, nt),
            in_specs=[
                act_spec,                                   # x tile
                const((1, D)), const((1, D)),               # ln gamma / beta
                const((D, D)), const((1, D)),               # w1, b1
                const((D, D)), const((1, D)),               # w2, b2
                const((D, D)), const((D, D)),               # wg_x_in, wg_a_in
                const((D, D)), const((D, D)),               # wg_x_fg, wg_a_fg
                const((1, D)), const((1, D)),               # bg_in, bg_fg
            ],
            out_specs=out_specs,
            scratch_shapes=[
                pltpu.VMEM((1, D), jnp.float32),            # running row-sum
                pltpu.VMEM((T, T), jnp.bfloat16),           # hoisted tri mask
            ],
        ),
        compiler_params=pltpu.CompilerParams(
            # batch: megacore-parallel (v7x); seq tiles: sequential carry.
            dimension_semantics=("parallel", "arbitrary"),
            vmem_limit_bytes=_vmem_limit_bytes(T, D, x_bytes, out_bytes, n_out),
        ),
        cost_estimate=cost,
    )

    outs = fn(x, params["gamma"], params["beta"],
              params["w1"], params["b1"], params["w2"], params["b2"],
              params["wg_x_in"], params["wg_a_in"],
              params["wg_x_fg"], params["wg_a_fg"],
              params["bg_in"], params["bg_fg"])
    if Lp != L:
        outs = [o[:, :L, :] for o in outs]
    if return_average:
        return outs[0], outs[1]
    return outs[0]


def _reference(inputs, params):
    """Pure-JAX f32 reference of the PyTorch forward (dropout disabled)."""
    B, L, D = inputs.shape
    tri = jnp.tril(jnp.ones((L, L), jnp.float32))
    mask = tri * (1.0 / jnp.arange(1, L + 1, dtype=jnp.float32))[:, None]
    avg = jnp.einsum("ij,bjd->bid", mask, inputs)
    mu = jnp.mean(avg, -1, keepdims=True)
    var = jnp.mean((avg - mu) ** 2, -1, keepdims=True)
    ln = (avg - mu) / jnp.sqrt(var + 1e-6) * params["ln_gamma"] + params["ln_beta"]
    h = jnp.maximum(ln @ params["w1"] + params["b1"], 0.0)
    avg_out = h @ params["w2"] + params["b2"] + avg
    cat = jnp.concatenate([inputs, avg_out], -1)
    gates = cat @ params["wg"] + params["bg"]
    ig, fg = gates[..., :D], gates[..., D:]
    gated = jax.nn.sigmoid(ig) * inputs + jax.nn.sigmoid(fg) * avg_out
    return gated, avg_out


def init_params(key, model_dim):
    D = model_dim
    ks = jax.random.split(key, 6)
    s = 0.1
    return {
        "ln_gamma": jnp.ones((D,), jnp.float32),
        "ln_beta": jnp.zeros((D,), jnp.float32),
        "w1": s * jax.random.normal(ks[0], (D, D), jnp.float32),
        "b1": s * jax.random.normal(ks[1], (D,), jnp.float32),
        "w2": s * jax.random.normal(ks[2], (D, D), jnp.float32),
        "b2": s * jax.random.normal(ks[3], (D,), jnp.float32),
        "wg": s * jax.random.normal(ks[4], (2 * D, 2 * D), jnp.float32),
        "bg": s * jax.random.normal(ks[5], (2 * D,), jnp.float32),
    }


if __name__ == "__main__":
    key = jax.random.PRNGKey(0)
    k_x, k_p, k_x2, k_x3 = jax.random.split(key, 4)

    # bf16 MXU matmuls (f32 accumulation) vs. an all-f32 reference.
    ATOL = RTOL = 2e-2

    B, L, D = 2, 8, 32
    params = init_params(k_p, D)
    prepared = prepare_params(params)          # pre-cast / pre-split once

    # Case 1: single sequence tile.
    x = jax.random.normal(k_x, (B, L, D), jnp.float32)
    gate_out, avg_out = average_attention(x, prepared)
    gate_out = jax.block_until_ready(gate_out)
    avg_out = jax.block_until_ready(avg_out)
    gate_ref, avg_ref = _reference(x, params)
    assert jnp.allclose(gate_out, gate_ref, atol=ATOL, rtol=RTOL)
    assert jnp.allclose(avg_out, avg_ref, atol=ATOL, rtol=RTOL)

    # Case 2: multiple sequence tiles — exercises the carried running row-sum.
    B2, L2 = 2, 16
    x2 = jax.random.normal(k_x2, (B2, L2, D), jnp.float32)
    gate_out2, avg_out2 = average_attention(x2, prepared, block_rows=8)
    gate_out2 = jax.block_until_ready(gate_out2)
    avg_out2 = jax.block_until_ready(avg_out2)
    gate_ref2, avg_ref2 = _reference(x2, params)
    assert jnp.allclose(gate_out2, gate_ref2, atol=ATOL, rtol=RTOL)
    assert jnp.allclose(avg_out2, avg_ref2, atol=ATOL, rtol=RTOL)

    # Case 3: L not divisible by the tile — exercises pad + slice fallback,
    # and the gating-only output path.
    B3, L3 = 2, 12
    x3 = jax.random.normal(k_x3, (B3, L3, D), jnp.float32)
    gate_out3 = average_attention(x3, prepared, block_rows=8, return_average=False)
    gate_out3 = jax.block_until_ready(gate_out3)
    gate_ref3, _ = _reference(x3, params)
    assert gate_out3.shape == (B3, L3, D)
    assert jnp.allclose(gate_out3, gate_ref3, atol=ATOL, rtol=RTOL)

    print("KERNEL_OK")
</pallas_src>

<mosaic_0001>
module attributes {stable_mosaic.version = 11 : i64} {
  func.func @_avg_attn_kernel(%arg0: i32, %arg1: i32, %arg2: memref<1x8x32xf32, #tpu.memory_space<vmem>>, %arg3: memref<1x32xf32, #tpu.memory_space<vmem>>, %arg4: memref<1x32xf32, #tpu.memory_space<vmem>>, %arg5: memref<32x32xbf16, #tpu.memory_space<vmem>>, %arg6: memref<1x32xf32, #tpu.memory_space<vmem>>, %arg7: memref<32x32xbf16, #tpu.memory_space<vmem>>, %arg8: memref<1x32xf32, #tpu.memory_space<vmem>>, %arg9: memref<32x32xbf16, #tpu.memory_space<vmem>>, %arg10: memref<32x32xbf16, #tpu.memory_space<vmem>>, %arg11: memref<32x32xbf16, #tpu.memory_space<vmem>>, %arg12: memref<32x32xbf16, #tpu.memory_space<vmem>>, %arg13: memref<1x32xf32, #tpu.memory_space<vmem>>, %arg14: memref<1x32xf32, #tpu.memory_space<vmem>>, %arg15: memref<1x8x32xf32, #tpu.memory_space<vmem>>, %arg16: memref<1x8x32xf32, #tpu.memory_space<vmem>>, %arg17: memref<1x32xf32, #tpu.memory_space<vmem>>, %arg18: memref<8x8xbf16, #tpu.memory_space<vmem>>) attributes {dimension_semantics = [#tpu.dimension_semantics<parallel>, #tpu.dimension_semantics<arbitrary>], iteration_bounds = array<i64: 2, 1>, scalar_prefetch = 0 : i64, scratch_operands = 2 : i64, tpu.core_type = #tpu.core_type<tc>, window_params = [{transform_indices = @transform_0, window_bounds = array<i64: 1, 8, 32>}, {pipeline_mode = #tpu.pipeline_mode<synchronous>, transform_indices = @transform_1, window_bounds = array<i64: 1, 32>}, {pipeline_mode = #tpu.pipeline_mode<synchronous>, transform_indices = @transform_2, window_bounds = array<i64: 1, 32>}, {pipeline_mode = #tpu.pipeline_mode<synchronous>, transform_indices = @transform_3, window_bounds = array<i64: 32, 32>}, {pipeline_mode = #tpu.pipeline_mode<synchronous>, transform_indices = @transform_4, window_bounds = array<i64: 1, 32>}, {pipeline_mode = #tpu.pipeline_mode<synchronous>, transform_indices = @transform_5, window_bounds = array<i64: 32, 32>}, {pipeline_mode = #tpu.pipeline_mode<synchronous>, transform_indices = @transform_6, window_bounds = array<i64: 1, 32>}, {pipeline_mode = #tpu.pipeline_mode<synchronous>, transform_indices = @transform_7, window_bounds = array<i64: 32, 32>}, {pipeline_mode = #tpu.pipeline_mode<synchronous>, transform_indices = @transform_8, window_bounds = array<i64: 32, 32>}, {pipeline_mode = #tpu.pipeline_mode<synchronous>, transform_indices = @transform_9, window_bounds = array<i64: 32, 32>}, {pipeline_mode = #tpu.pipeline_mode<synchronous>, transform_indices = @transform_10, window_bounds = array<i64: 32, 32>}, {pipeline_mode = #tpu.pipeline_mode<synchronous>, transform_indices = @transform_11, window_bounds = array<i64: 1, 32>}, {pipeline_mode = #tpu.pipeline_mode<synchronous>, transform_indices = @transform_12, window_bounds = array<i64: 1, 32>}, {transform_indices = @transform_13, window_bounds = array<i64: 1, 8, 32>}, {transform_indices = @transform_14, window_bounds = array<i64: 1, 8, 32>}]} {
    %c0_i32 = arith.constant 0 : i32
    %0 = arith.cmpi eq, %arg1, %c0_i32 : i32
    %1 = arith.extui %0 : i1 to i32
    %c0_i32_0 = arith.constant 0 : i32
    %2 = arith.cmpi ne, %1, %c0_i32_0 : i32
    scf.if %2 {
      %cst_57 = arith.constant 0.000000e+00 : f32
      %101 = vector.broadcast %cst_57 : f32 to vector<1x32xf32>
      %c0_58 = arith.constant 0 : index
      %c0_59 = arith.constant 0 : index
      %102 = vector.load %arg17[%c0_58, %c0_59] : memref<1x32xf32, #tpu.memory_space<vmem>>, vector<1x32xf32>
      tpu.vector_store %arg17[%c0_58, %c0_59], %101 {strides = array<i32>} : memref<1x32xf32, #tpu.memory_space<vmem>>, vector<1x32xf32>,
      %103 = tpu.iota {dimensions = array<i32: 0>} : vector<8x8xi32>
      %104 = tpu.iota {dimensions = array<i32: 1>} : vector<8x8xi32>
      %105 = arith.cmpi sle, %104, %103 : vector<8x8xi32>
      %106 = arith.extui %105 : vector<8x8xi1> to vector<8x8xi32>
      %107 = arith.sitofp %106 : vector<8x8xi32> to vector<8x8xf32>
      %108 = arith.truncf %107 : vector<8x8xf32> to vector<8x8xbf16>
      %c0_60 = arith.constant 0 : index
      %c0_61 = arith.constant 0 : index
      %109 = vector.load %arg18[%c0_60, %c0_61] : memref<8x8xbf16, #tpu.memory_space<vmem>>, vector<8x8xbf16>
      tpu.vector_store %arg18[%c0_60, %c0_61], %108 {strides = array<i32>} : memref<8x8xbf16, #tpu.memory_space<vmem>>, vector<8x8xbf16>,
    } else {
    }
    %c0 = arith.constant 0 : index
    %c0_1 = arith.constant 0 : index
    %c0_2 = arith.constant 0 : index
    %3 = vector.load %arg2[%c0, %c0_1, %c0_2] : memref<1x8x32xf32, #tpu.memory_space<vmem>>, vector<1x8x32xf32>
    %4 = vector.shape_cast %3 : vector<1x8x32xf32> to vector<8x32xf32>
    %c0_3 = arith.constant 0 : index
    %c0_4 = arith.constant 0 : index
    %c0_5 = arith.constant 0 : index
    %5 = vector.load %arg2[%c0_3, %c0_4, %c0_5] : memref<1x8x32xf32, #tpu.memory_space<vmem>>, vector<1x8x32xf32>
    %6 = vector.shape_cast %5 : vector<1x8x32xf32> to vector<8x32xf32>
    %7 = arith.truncf %6 : vector<8x32xf32> to vector<8x32xbf16>
    %c0_6 = arith.constant 0 : index
    %c0_7 = arith.constant 0 : index
    %8 = vector.load %arg18[%c0_6, %c0_7] : memref<8x8xbf16, #tpu.memory_space<vmem>>, vector<8x8xbf16>
    %cst = arith.constant dense<0.000000e+00> : vector<8x32xf32>
    %9 = tpu.matmul %8, %7, %cst {dimension_numbers = #tpu.dot_dimension_numbers<[1], [0], [0], [1], [0, 0, 1, 1], [], []>} : vector<8x8xbf16>, vector<8x32xbf16>, vector<8x32xf32> -> vector<8x32xf32>
    %c0_8 = arith.constant 0 : index
    %c0_9 = arith.constant 0 : index
    %10 = vector.load %arg17[%c0_8, %c0_9] : memref<1x32xf32, #tpu.memory_space<vmem>>, vector<1x32xf32>
    %11 = vector.broadcast %10 : vector<1x32xf32> to vector<8x32xf32>
    %12 = arith.addf %9, %11 : vector<8x32xf32>
    %13 = vector.extract_strided_slice %12 {offsets = [7, 0], sizes = [1, 32], strides = [1, 1]} : vector<8x32xf32> to vector<1x32xf32>
    %c0_10 = arith.constant 0 : index
    %c0_11 = arith.constant 0 : index
    %14 = vector.load %arg17[%c0_10, %c0_11] : memref<1x32xf32, #tpu.memory_space<vmem>>, vector<1x32xf32>
    tpu.vector_store %arg17[%c0_10, %c0_11], %13 {strides = array<i32>} : memref<1x32xf32, #tpu.memory_space<vmem>>, vector<1x32xf32>,
    %c8_i32 = arith.constant 8 : i32
    %15 = arith.muli %arg1, %c8_i32 : i32
    %16 = tpu.iota {dimensions = array<i32: 0>} : vector<8x1xi32>
    %17 = vector.broadcast %15 : i32 to vector<8x1xi32>
    %18 = arith.addi %17, %16 : vector<8x1xi32>
    %c1_i32 = arith.constant 1 : i32
    %19 = vector.broadcast %c1_i32 : i32 to vector<8x1xi32>
    %20 = arith.addi %18, %19 : vector<8x1xi32>
    %21 = arith.sitofp %20 : vector<8x1xi32> to vector<8x1xf32>
    %cst_12 = arith.constant 1.000000e+00 : f32
    %22 = vector.broadcast %cst_12 : f32 to vector<8x1xf32>
    %23 = arith.divf %22, %21 : vector<8x1xf32>
    %24 = vector.broadcast %23 : vector<8x1xf32> to vector<8x32xf32>
    %25 = arith.mulf %12, %24 : vector<8x32xf32>
    %cst_13 = arith.constant dense<0.000000e+00> : vector<8xf32>
    %26 = vector.multi_reduction <add>, %25, %cst_13 [1] : vector<8x32xf32> to vector<8xf32>
    %27 = vector.shape_cast %26 : vector<8xf32> to vector<8x1xf32>
    %cst_14 = arith.constant 3.200000e+01 : f32
    %28 = vector.broadcast %cst_14 : f32 to vector<8x1xf32>
    %29 = arith.divf %27, %28 : vector<8x1xf32>
    %30 = vector.broadcast %29 : vector<8x1xf32> to vector<8x32xf32>
    %31 = arith.subf %25, %30 : vector<8x32xf32>
    %32 = arith.mulf %31, %31 : vector<8x32xf32>
    %cst_15 = arith.constant dense<0.000000e+00> : vector<8xf32>
    %33 = vector.multi_reduction <add>, %32, %cst_15 [1] : vector<8x32xf32> to vector<8xf32>
    %34 = vector.shape_cast %33 : vector<8xf32> to vector<8x1xf32>
    %cst_16 = arith.constant 3.200000e+01 : f32
    %35 = vector.broadcast %cst_16 : f32 to vector<8x1xf32>
    %36 = arith.divf %34, %35 : vector<8x1xf32>
    %37 = vector.broadcast %29 : vector<8x1xf32> to vector<8x32xf32>
    %38 = arith.subf %25, %37 : vector<8x32xf32>
    %cst_17 = arith.constant 9.99999997E-7 : f32
    %39 = vector.broadcast %cst_17 : f32 to vector<8x1xf32>
    %40 = arith.addf %36, %39 : vector<8x1xf32>
    %41 = math.rsqrt %40 : vector<8x1xf32>
    %42 = vector.broadcast %41 : vector<8x1xf32> to vector<8x32xf32>
    %43 = arith.mulf %38, %42 : vector<8x32xf32>
    %c0_18 = arith.constant 0 : index
    %c0_19 = arith.constant 0 : index
    %44 = vector.load %arg3[%c0_18, %c0_19] : memref<1x32xf32, #tpu.memory_space<vmem>>, vector<1x32xf32>
    %45 = vector.broadcast %44 : vector<1x32xf32> to vector<8x32xf32>
    %46 = arith.mulf %43, %45 : vector<8x32xf32>
    %c0_20 = arith.constant 0 : index
    %c0_21 = arith.constant 0 : index
    %47 = vector.load %arg4[%c0_20, %c0_21] : memref<1x32xf32, #tpu.memory_space<vmem>>, vector<1x32xf32>
    %48 = vector.broadcast %47 : vector<1x32xf32> to vector<8x32xf32>
    %49 = arith.addf %46, %48 : vector<8x32xf32>
    %50 = arith.truncf %49 : vector<8x32xf32> to vector<8x32xbf16>
    %c0_22 = arith.constant 0 : index
    %c0_23 = arith.constant 0 : index
    %51 = vector.load %arg5[%c0_22, %c0_23] : memref<32x32xbf16, #tpu.memory_space<vmem>>, vector<32x32xbf16>
    %cst_24 = arith.constant dense<0.000000e+00> : vector<8x32xf32>
    %52 = tpu.matmul %50, %51, %cst_24 {dimension_numbers = #tpu.dot_dimension_numbers<[1], [0], [0], [1], [0, 0, 1, 1], [], []>} : vector<8x32xbf16>, vector<32x32xbf16>, vector<8x32xf32> -> vector<8x32xf32>
    %c0_25 = arith.constant 0 : index
    %c0_26 = arith.constant 0 : index
    %53 = vector.load %arg6[%c0_25, %c0_26] : memref<1x32xf32, #tpu.memory_space<vmem>>, vector<1x32xf32>
    %54 = vector.broadcast %53 : vector<1x32xf32> to vector<8x32xf32>
    %55 = arith.addf %52, %54 : vector<8x32xf32>
    %cst_27 = arith.constant 0.000000e+00 : f32
    %56 = vector.broadcast %cst_27 : f32 to vector<8x32xf32>
    %57 = arith.maximumf %55, %56 : vector<8x32xf32>
    %58 = arith.truncf %57 : vector<8x32xf32> to vector<8x32xbf16>
    %c0_28 = arith.constant 0 : index
    %c0_29 = arith.constant 0 : index
    %59 = vector.load %arg7[%c0_28, %c0_29] : memref<32x32xbf16, #tpu.memory_space<vmem>>, vector<32x32xbf16>
    %cst_30 = arith.constant dense<0.000000e+00> : vector<8x32xf32>
    %60 = tpu.matmul %58, %59, %cst_30 {dimension_numbers = #tpu.dot_dimension_numbers<[1], [0], [0], [1], [0, 0, 1, 1], [], []>} : vector<8x32xbf16>, vector<32x32xbf16>, vector<8x32xf32> -> vector<8x32xf32>
    %c0_31 = arith.constant 0 : index
    %c0_32 = arith.constant 0 : index
    %61 = vector.load %arg8[%c0_31, %c0_32] : memref<1x32xf32, #tpu.memory_space<vmem>>, vector<1x32xf32>
    %62 = vector.broadcast %61 : vector<1x32xf32> to vector<8x32xf32>
    %63 = arith.addf %60, %62 : vector<8x32xf32>
    %64 = arith.addf %63, %25 : vector<8x32xf32>
    %65 = arith.truncf %64 : vector<8x32xf32> to vector<8x32xbf16>
    %c0_33 = arith.constant 0 : index
    %c0_34 = arith.constant 0 : index
    %66 = vector.load %arg9[%c0_33, %c0_34] : memref<32x32xbf16, #tpu.memory_space<vmem>>, vector<32x32xbf16>
    %cst_35 = arith.constant dense<0.000000e+00> : vector<8x32xf32>
    %67 = tpu.matmul %7, %66, %cst_35 {dimension_numbers = #tpu.dot_dimension_numbers<[1], [0], [0], [1], [0, 0, 1, 1], [], []>} : vector<8x32xbf16>, vector<32x32xbf16>, vector<8x32xf32> -> vector<8x32xf32>
    %c0_36 = arith.constant 0 : index
    %c0_37 = arith.constant 0 : index
    %68 = vector.load %arg10[%c0_36, %c0_37] : memref<32x32xbf16, #tpu.memory_space<vmem>>, vector<32x32xbf16>
    %cst_38 = arith.constant dense<0.000000e+00> : vector<8x32xf32>
    %69 = tpu.matmul %65, %68, %cst_38 {dimension_numbers = #tpu.dot_dimension_numbers<[1], [0], [0], [1], [0, 0, 1, 1], [], []>} : vector<8x32xbf16>, vector<32x32xbf16>, vector<8x32xf32> -> vector<8x32xf32>
    %70 = arith.addf %67, %69 : vector<8x32xf32>
    %c0_39 = arith.constant 0 : index
    %c0_40 = arith.constant 0 : index
    %71 = vector.load %arg13[%c0_39, %c0_40] : memref<1x32xf32, #tpu.memory_space<vmem>>, vector<1x32xf32>
    %72 = vector.broadcast %71 : vector<1x32xf32> to vector<8x32xf32>
    %73 = arith.addf %70, %72 : vector<8x32xf32>
    %c0_41 = arith.constant 0 : index
    %c0_42 = arith.constant 0 : index
    %74 = vector.load %arg11[%c0_41, %c0_42] : memref<32x32xbf16, #tpu.memory_space<vmem>>, vector<32x32xbf16>
    %cst_43 = arith.constant dense<0.000000e+00> : vector<8x32xf32>
    %75 = tpu.matmul %7, %74, %cst_43 {dimension_numbers = #tpu.dot_dimension_numbers<[1], [0], [0], [1], [0, 0, 1, 1], [], []>} : vector<8x32xbf16>, vector<32x32xbf16>, vector<8x32xf32> -> vector<8x32xf32>
    %c0_44 = arith.constant 0 : index
    %c0_45 = arith.constant 0 : index
    %76 = vector.load %arg12[%c0_44, %c0_45] : memref<32x32xbf16, #tpu.memory_space<vmem>>, vector<32x32xbf16>
    %cst_46 = arith.constant dense<0.000000e+00> : vector<8x32xf32>
    %77 = tpu.matmul %65, %76, %cst_46 {dimension_numbers = #tpu.dot_dimension_numbers<[1], [0], [0], [1], [0, 0, 1, 1], [], []>} : vector<8x32xbf16>, vector<32x32xbf16>, vector<8x32xf32> -> vector<8x32xf32>
    %78 = arith.addf %75, %77 : vector<8x32xf32>
    %c0_47 = arith.constant 0 : index
    %c0_48 = arith.constant 0 : index
    %79 = vector.load %arg14[%c0_47, %c0_48] : memref<1x32xf32, #tpu.memory_space<vmem>>, vector<1x32xf32>
    %80 = vector.broadcast %79 : vector<1x32xf32> to vector<8x32xf32>
    %81 = arith.addf %78, %80 : vector<8x32xf32>
    %82 = arith.negf %73 : vector<8x32xf32>
    %83 = math.exp %82 : vector<8x32xf32>
    %cst_49 = arith.constant 1.000000e+00 : f32
    %84 = vector.broadcast %cst_49 : f32 to vector<8x32xf32>
    %85 = arith.addf %84, %83 : vector<8x32xf32>
    %86 = arith.divf %84, %85 : vector<8x32xf32>
    %87 = arith.mulf %86, %4 : vector<8x32xf32>
    %88 = arith.negf %81 : vector<8x32xf32>
    %89 = math.exp %88 : vector<8x32xf32>
    %cst_50 = arith.constant 1.000000e+00 : f32
    %90 = vector.broadcast %cst_50 : f32 to vector<8x32xf32>
    %91 = arith.addf %90, %89 : vector<8x32xf32>
    %92 = arith.divf %90, %91 : vector<8x32xf32>
    %93 = arith.mulf %92, %64 : vector<8x32xf32>
    %94 = arith.addf %87, %93 : vector<8x32xf32>
    %c0_51 = arith.constant 0 : index
    %c0_52 = arith.constant 0 : index
    %c0_53 = arith.constant 0 : index
    %95 = vector.load %arg15[%c0_51, %c0_52, %c0_53] : memref<1x8x32xf32, #tpu.memory_space<vmem>>, vector<1x8x32xf32>
    %96 = vector.shape_cast %95 : vector<1x8x32xf32> to vector<8x32xf32>
    %97 = vector.shape_cast %94 : vector<8x32xf32> to vector<1x8x32xf32>
    tpu.vector_store %arg15[%c0_51, %c0_52, %c0_53], %97 {strides = array<i32>} : memref<1x8x32xf32, #tpu.memory_space<vmem>>, vector<1x8x32xf32>,
    %c0_54 = arith.constant 0 : index
    %c0_55 = arith.constant 0 : index
    %c0_56 = arith.constant 0 : index
    %98 = vector.load %arg16[%c0_54, %c0_55, %c0_56] : memref<1x8x32xf32, #tpu.memory_space<vmem>>, vector<1x8x32xf32>
    %99 = vector.shape_cast %98 : vector<1x8x32xf32> to vector<8x32xf32>
    %100 = vector.shape_cast %64 : vector<8x32xf32> to vector<1x8x32xf32>
    tpu.vector_store %arg16[%c0_54, %c0_55, %c0_56], %100 {strides = array<i32>} : memref<1x8x32xf32, #tpu.memory_space<vmem>>, vector<1x8x32xf32>,
    return
  }
  func.func @transform_0(%arg0: i32, %arg1: i32) -> (i32, i32, i32) {
    %c0_i32 = arith.constant 0 : i32
    %c0_i32_0 = arith.constant 0 : i32
    return %arg0, %arg1, %c0_i32 : i32, i32, i32
  }
  func.func @transform_1(%arg0: i32, %arg1: i32) -> (i32, i32) {
    %c0_i32 = arith.constant 0 : i32
    %c0_i32_0 = arith.constant 0 : i32
    %c0_i32_1 = arith.constant 0 : i32
    return %c0_i32, %c0_i32_0 : i32, i32
  }
  func.func @transform_2(%arg0: i32, %arg1: i32) -> (i32, i32) {
    %c0_i32 = arith.constant 0 : i32
    %c0_i32_0 = arith.constant 0 : i32
    %c0_i32_1 = arith.constant 0 : i32
    return %c0_i32, %c0_i32_0 : i32, i32
  }
  func.func @transform_3(%arg0: i32, %arg1: i32) -> (i32, i32) {
    %c0_i32 = arith.constant 0 : i32
    %c0_i32_0 = arith.constant 0 : i32
    %c0_i32_1 = arith.constant 0 : i32
    return %c0_i32, %c0_i32_0 : i32, i32
  }
  func.func @transform_4(%arg0: i32, %arg1: i32) -> (i32, i32) {
    %c0_i32 = arith.constant 0 : i32
    %c0_i32_0 = arith.constant 0 : i32
    %c0_i32_1 = arith.constant 0 : i32
    return %c0_i32, %c0_i32_0 : i32, i32
  }
  func.func @transform_5(%arg0: i32, %arg1: i32) -> (i32, i32) {
    %c0_i32 = arith.constant 0 : i32
    %c0_i32_0 = arith.constant 0 : i32
    %c0_i32_1 = arith.constant 0 : i32
    return %c0_i32, %c0_i32_0 : i32, i32
  }
  func.func @transform_6(%arg0: i32, %arg1: i32) -> (i32, i32) {
    %c0_i32 = arith.constant 0 : i32
    %c0_i32_0 = arith.constant 0 : i32
    %c0_i32_1 = arith.constant 0 : i32
    return %c0_i32, %c0_i32_0 : i32, i32
  }
  func.func @transform_7(%arg0: i32, %arg1: i32) -> (i32, i32) {
    %c0_i32 = arith.constant 0 : i32
    %c0_i32_0 = arith.constant 0 : i32
    %c0_i32_1 = arith.constant 0 : i32
    return %c0_i32, %c0_i32_0 : i32, i32
  }
  func.func @transform_8(%arg0: i32, %arg1: i32) -> (i32, i32) {
    %c0_i32 = arith.constant 0 : i32
    %c0_i32_0 = arith.constant 0 : i32
    %c0_i32_1 = arith.constant 0 : i32
    return %c0_i32, %c0_i32_0 : i32, i32
  }
  func.func @transform_9(%arg0: i32, %arg1: i32) -> (i32, i32) {
    %c0_i32 = arith.constant 0 : i32
    %c0_i32_0 = arith.constant 0 : i32
    %c0_i32_1 = arith.constant 0 : i32
    return %c0_i32, %c0_i32_0 : i32, i32
  }
  func.func @transform_10(%arg0: i32, %arg1: i32) -> (i32, i32) {
    %c0_i32 = arith.constant 0 : i32
    %c0_i32_0 = arith.constant 0 : i32
    %c0_i32_1 = arith.constant 0 : i32
    return %c0_i32, %c0_i32_0 : i32, i32
  }
  func.func @transform_11(%arg0: i32, %arg1: i32) -> (i32, i32) {
    %c0_i32 = arith.constant 0 : i32
    %c0_i32_0 = arith.constant 0 : i32
    %c0_i32_1 = arith.constant 0 : i32
    return %c0_i32, %c0_i32_0 : i32, i32
  }
  func.func @transform_12(%arg0: i32, %arg1: i32) -> (i32, i32) {
    %c0_i32 = arith.constant 0 : i32
    %c0_i32_0 = arith.constant 0 : i32
    %c0_i32_1 = arith.constant 0 : i32
    return %c0_i32, %c0_i32_0 : i32, i32
  }
  func.func @transform_13(%arg0: i32, %arg1: i32) -> (i32, i32, i32) {
    %c0_i32 = arith.constant 0 : i32
    %c0_i32_0 = arith.constant 0 : i32
    return %arg0, %arg1, %c0_i32 : i32, i32, i32
  }
  func.func @transform_14(%arg0: i32, %arg1: i32) -> (i32, i32, i32) {
    %c0_i32 = arith.constant 0 : i32
    %c0_i32_0 = arith.constant 0 : i32
    return %arg0, %arg1, %c0_i32 : i32, i32, i32
  }
}

</mosaic_0001>

<bundles_post_ra>
// kernel: tpu_custom_call.1
= control target key start
LH: loop header
LB: loop body
LE: loop exit
PB: predicated region body
PF: predicated region fallthrough
CT: control target
= control target key end

     0   :  { %s2482_s0 = inlined_call_operand.hbm [shape: f32[2,8,32], index: 0, kind: input, shape index: {}]   ;;  %s2483_s1 = inlined_call_operand.vmem [shape: f32[1,32], index: 1, kind: input, shape index: {}]   ;;  %s2484_s2 = inlined_call_operand.vmem [shape: f32[1,32], index: 2, kind: input, shape index: {}]   ;;  %s2485_s3 = inlined_call_operand.hbm [shape: bf16[32,32], index: 3, kind: input, shape index: {}]   ;;  %s2486_s4 = inlined_call_operand.hbm [shape: f32[1,32], index: 4, kind: input, shape index: {}]   ;;  %s2487_s5 = inlined_call_operand.vmem [shape: bf16[32,32], index: 5, kind: input, shape index: {}]   ;;  %s2488_s6 = inlined_call_operand.hbm [shape: f32[1,32], index: 6, kind: input, shape index: {}]   ;;  %s2489_s7 = inlined_call_operand.hbm [shape: bf16[32,32], index: 7, kind: input, shape index: {}]   ;;  %s2490_s8 = inlined_call_operand.hbm [shape: bf16[32,32], index: 8, kind: input, shape index: {}]   ;;  %s2491_s9 = inlined_call_operand.vmem [shape: bf16[32,32], index: 9, kind: input, shape index: {}]   ;;  %s2492_s10 = inlined_call_operand.hbm [shape: bf16[32,32], index: 10, kind: input, shape index: {}]   ;;  %s2493_s11 = inlined_call_operand.vmem [shape: f32[1,32], index: 11, kind: input, shape index: {}]   ;;  %s2494_s12 = inlined_call_operand.vmem [shape: f32[1,32], index: 12, kind: input, shape index: {}]   ;;  %s2495_s13 = inlined_call_operand.hbm [shape: f32[2,8,32], index: 13, kind: output, shape index: {0}]   ;;  %s2496_s14 = inlined_call_operand.hbm [shape: f32[2,8,32], index: 14, kind: output, shape index: {1}]  }
   0x1   :  { %2507 = sst [smem:[#allocation26_spill]] %s2482_s0 }
   0x2   :  { %2508 = sst [smem:[#allocation27_spill]] %s2483_s1 }
   0x3   :  { %2509 = sst [smem:[#allocation28_spill]] %s2484_s2 }
   0x4   :  { %2510 = sst [smem:[#allocation29_spill]] %s2485_s3 }
   0x5   :  { %2511 = sst [smem:[#allocation30_spill]] %s2486_s4 }
   0x6   :  { %2512 = sst [smem:[#allocation31_spill]] %s2491_s9 }
   0x7   :  { %2513 = sst [smem:[#allocation32_spill]] %s2493_s11 }
   0x8   :  { %2514 = sst [smem:[#allocation33_spill]] %s2494_s12 }
   0x9   :  { %2515 = sst [smem:[#allocation34_spill]] %s2495_s13 }
   0xa   :  { %2516 = sst [smem:[#allocation35_spill]] %s2496_s14 }
   0xb   :  { %20 = vsyncpa [#allocation5], 0 }
   0xc   :  { %22 = vsyncpa [#allocation5 + $0x1], 0 }
   0xd   :  { %23 = vsyncpa [#allocation8], 0 }
   0xe   :  { %24 = vsyncpa [#allocation11], 0 }
   0xf   :  { %25 = vsyncpa [#allocation14], 0 }
  0x10   :  { %26 = vsyncpa [#allocation6], 0 }
  0x11   :  { %28 = vsyncpa [#allocation6 + $0x1], 0 }
  0x12   :  { %29 = vsyncpa [#allocation18], 0 }
  0x13   :  { %31 = vsyncpa [#allocation18 + $0x1], 0  ;;  %s2018_s29 = smov 0   ;;  %s2020_s30 = smov 0  }
  0x14   :  { %s2022_s15 = smov 0   ;;  %s2024_s16 = smov 0  }
  0x15   :  { %s2026_s17 = smov 0   ;;  %s2028_s18 = smov 0  }
  0x16 LB: > { %2517 = sst [smem:[#allocation25_spill]] %s1920_s16  ;;  %s2497_s19 = sadd.s32 4294967295, %s1928_s18   ;;  %s1928_s18 = sphi %s2028_s18, %s37_s18   ;;  %s1924_s17 = sphi %s2026_s17, %s2550_s17   ;;  %s1920_s16 = sphi %s2024_s16, %s2549_s16   ;;  %s1916_s15 = sphi %s2022_s15, %s2548_s15   ;;  %s1912_s30 = sphi %s2020_s30, %s2547_s30   ;;  %s1908_s29 = sphi %s2018_s29, %s2546_s29  }
  0x17   : > { %p1319_p0 = scmp.ge.s32.totalorder %s1928_s18, 1  ;;  %p2052_p1 = scmp.eq.s32.totalorder %s2497_s19, 0 }
  0x18   : > { %p390_p2 = scmp.lt.s32.totalorder %s1928_s18, 3  ;;  %s1930_s22 = smov [#allocation7]  }
  0x19   : > { %s2518_s20 = scalar_select %p2052_p1, 1, 0 }
  0x1a   : > { %p2057_p3 = pnand %p1319_p0, %p390_p2  ;;  %s408_s23 = sshll.u32 %s1930_s22, 4  ;;  %s2061_s23 = int_to_ptr.vmem [resolvable:$true] %s408_s23 }
  0x1b   : > { %s1931_s25 = smov [#allocation10]   ;;  %s1932_s27 = smov [#allocation13]  }
  0x1c   : > { %s2519_s21 = scalar_select %p2057_p3, 1, 0 }
  0x1d   : > { %p1478_p4 = pneg %p2057_p3  ;;  %s436_s26 = sshll.u32 %s1931_s25, 4  ;;  %s2072_s26 = int_to_ptr.vmem [resolvable:$true] %s436_s26 }
  0x1e   : > { %s2074_s28 = sshll.u32 %s1932_s27, 4  ;;  %s2521_s3 = sld [smem:[#allocation29_spill]]  ;;  %s460_s28 = int_to_ptr.vmem [resolvable:$true] %s2074_s28 }
  0x1f   : > { %p2068_p6 = pnand %p1478_p4, %p2052_p1 }
  0x21   : > { %p2084_p8 = pneg %p2068_p6 }
  0x24   : > { %s1604_s13 = scalar_lea.hbm %s2521_s3, 256 }
  0x25   : > { %p1605_p7 = scmp.ne.s32.totalorder %s2521_s3, %s1604_s13  ;;  %p1611_p11 = scmp.lt.u32.totalorder %s1604_s13, %s2521_s3 }
  0x27   : > { %p1607_p9 = pnand %p2084_p8, %p1605_p7 }
  0x29   : > { %p1608_p10 = pneg %p1607_p9 }
  0x2b   : > { %p1613_p12 = pnand %p1611_p11, %p1608_p10 }
  0x2d   : > { %1616 = shalt.err (!%p1613_p12)
}
  0x2e   : > { %s1617_s11 = scalar_lea.vmem %s2061_s23, 256  ;;  %p1625_p4 = scmp.lt.s32.totalorder %s2061_s23, %s2061_s23 }
  0x2f   : > { %p1618_p13 = scmp.ne.s32.totalorder %s2061_s23, %s1617_s11  ;;  %p1626_p5 = scmp.lt.s32.totalorder %s1617_s11, %s1617_s11 }
  0x31   : > { %p1620_p0 = pnand %p1618_p13, %p2084_p8  ;;  %p1627_p7 = por %p1626_p5, %p1625_p4 }
  0x33   : > { %p1621_p2 = pneg %p1620_p0 }
  0x35   : > { %p1628_p9 = pnand %p1627_p7, %p1621_p2 }
  0x37   : > { %1631 = shalt.err (!%p1628_p9)
}
  0x38   : > { %s1933_s12 = smov 64   ;;  %s1934_s13 = smov 4  }
  0x39   : > { %1481 = dma.hbm_to_vmem [thread:$0]  (!%p2068_p6), %s2521_s3, 256, %s2061_s23, [#allocation8], %s1933_s12, %s1933_s12, %s1934_s13  }
  0x3a   : > { %s1632_s11 = scalar_lea.hbm %s2488_s6, 16 }
  0x3b   : > { %p1633_p5 = scmp.ne.s32.totalorder %s2488_s6, %s1632_s11  ;;  %p1639_p12 = scmp.lt.u32.totalorder %s1632_s11, %s2488_s6 }
  0x3d   : > { %p1635_p10 = pnand %p1633_p5, %p2084_p8 }
  0x3f   : > { %p1636_p11 = pneg %p1635_p10 }
  0x41   : > { %p1641_p13 = pnand %p1639_p12, %p1636_p11 }
  0x43   : > { %1644 = shalt.err (!%p1641_p13)
}
  0x44   : > { %s1645_s23 = scalar_lea.vmem %s2072_s26, 16  ;;  %s1652_s9 = scalar_lea.vmem %s2072_s26, 32 }
  0x45   : > { %p1646_p0 = scmp.ne.s32.totalorder %s2072_s26, %s1645_s23  ;;  %p1653_p7 = scmp.lt.s32.totalorder %s2072_s26, %s2072_s26 }
  0x46   : > { %p1654_p9 = scmp.lt.s32.totalorder %s1652_s9, %s1645_s23 }
  0x47   : > { %p1648_p2 = pnand %p1646_p0, %p2084_p8 }
  0x48   : > { %p1655_p5 = por %p1654_p9, %p1653_p7 }
  0x49   : > { %p1649_p4 = pneg %p1648_p2 }
  0x4b   : > { %p1656_p10 = pnand %p1655_p5, %p1649_p4 }
  0x4d   : > { %1659 = shalt.err (!%p1656_p10)
}
  0x4e   : > { %1487 = dma.hbm_to_vmem [thread:$0]  (!%p2068_p6), %s2488_s6, 16, %s2072_s26, [#allocation11]  }
  0x4f   : > { %s1660_s22 = scalar_lea.hbm %s2490_s8, 256 }
  0x50   : > { %p1661_p11 = scmp.ne.s32.totalorder %s2490_s8, %s1660_s22  ;;  %p1667_p0 = scmp.lt.u32.totalorder %s1660_s22, %s2490_s8 }
  0x52   : > { %p1663_p12 = pnand %p1661_p11, %p2084_p8 }
  0x54   : > { %p1664_p13 = pneg %p1663_p12 }
  0x56   : > { %p1669_p2 = pnand %p1667_p0, %p1664_p13 }
  0x58   : > { %1672 = shalt.err (!%p1669_p2)
}
  0x59   : > { %s1673_s9 = scalar_lea.vmem %s460_s28, 256  ;;  %p1681_p5 = scmp.lt.s32.totalorder %s460_s28, %s460_s28 }
  0x5a   : > { %p1674_p4 = scmp.ne.s32.totalorder %s460_s28, %s1673_s9  ;;  %p1682_p10 = scmp.lt.s32.totalorder %s1673_s9, %s1673_s9 }
  0x5c   : > { %p1676_p7 = pnand %p1674_p4, %p2084_p8  ;;  %p1683_p3 = por %p1682_p10, %p1681_p5 }
  0x5e   : > { %p1677_p9 = pneg %p1676_p7 }
  0x60   : > { %p1684_p1 = pnand %p1683_p3, %p1677_p9 }
  0x62   : > { %1687 = shalt.err (!%p1684_p1)
}
  0x63   : > { %1493 = dma.hbm_to_vmem [thread:$0]  (!%p2068_p6), %s2490_s8, 256, %s460_s28, [#allocation14], %s1933_s12, %s1933_s12, %s1934_s13  }
  0x64   : > { %s1935_s2 = smov [#allocation9]   ;;  %s1936_s19 = smov [#allocation12]  }
  0x65   : > { %s422_s16 = sshll.u32 %s1935_s2, 4  ;;  %s446_s22 = sshll.u32 %s1936_s19, 4  ;;  %s423_s16 = int_to_ptr.vmem [resolvable:$true] %s422_s16  ;;  %s447_s22 = int_to_ptr.vmem [resolvable:$true] %s446_s22 }
  0x66   : > { %s2523_s4 = sld [smem:[#allocation30_spill]] }
  0x6c   : > { %s1688_s11 = scalar_lea.hbm %s2523_s4, 16 }
  0x6d   : > { %p1689_p1 = scmp.ne.s32.totalorder %s2523_s4, %s1688_s11  ;;  %p1695_p12 = scmp.lt.u32.totalorder %s1688_s11, %s2523_s4 }
  0x6f   : > { %p1691_p3 = pnand %p1689_p1, %p2084_p8 }
  0x71   : > { %p1692_p11 = pneg %p1691_p3 }
  0x73   : > { %p1697_p13 = pnand %p1695_p12, %p1692_p11 }
  0x75   : > { %1700 = shalt.err (!%p1697_p13)
}
  0x76   : > { %s1701_s28 = scalar_lea.vmem %s423_s16, 16  ;;  %s1708_s1 = scalar_lea.vmem %s423_s16, 32 }
  0x77   : > { %p1702_p0 = scmp.ne.s32.totalorder %s423_s16, %s1701_s28  ;;  %p1709_p7 = scmp.lt.s32.totalorder %s423_s16, %s423_s16 }
  0x78   : > { %p1710_p9 = scmp.lt.s32.totalorder %s1708_s1, %s1701_s28 }
  0x79   : > { %p1704_p2 = pnand %p1702_p0, %p2084_p8 }
  0x7a   : > { %p1711_p5 = por %p1710_p9, %p1709_p7 }
  0x7b   : > { %p1705_p4 = pneg %p1704_p2 }
  0x7d   : > { %p1712_p10 = pnand %p1711_p5, %p1705_p4 }
  0x7f   : > { %1715 = shalt.err (!%p1712_p10)
}
  0x80   : > { %1484 = dma.hbm_to_vmem [thread:$0]  (!%p2068_p6), %s2523_s4, 16, %s423_s16, [#allocation8]  }
  0x81   : > { %s1716_s27 = scalar_lea.hbm %s2489_s7, 256 }
  0x82   : > { %p1717_p1 = scmp.ne.s32.totalorder %s2489_s7, %s1716_s27  ;;  %p1723_p12 = scmp.lt.u32.totalorder %s1716_s27, %s2489_s7 }
  0x84   : > { %p1719_p3 = pnand %p1717_p1, %p2084_p8 }
  0x86   : > { %p1720_p11 = pneg %p1719_p3 }
  0x88   : > { %p1725_p13 = pnand %p1723_p12, %p1720_p11 }
  0x8a   : > { %1728 = shalt.err (!%p1725_p13)
}
  0x8b   : > { %s1729_s28 = scalar_lea.vmem %s447_s22, 256  ;;  %p1737_p7 = scmp.lt.s32.totalorder %s447_s22, %s447_s22 }
  0x8c   : > { %p1730_p0 = scmp.ne.s32.totalorder %s447_s22, %s1729_s28  ;;  %p1738_p9 = scmp.lt.s32.totalorder %s1729_s28, %s1729_s28 }
  0x8e   : > { %p1732_p2 = pnand %p1730_p0, %p2084_p8  ;;  %p1739_p5 = por %p1738_p9, %p1737_p7 }
  0x90   : > { %p1733_p4 = pneg %p1732_p2 }
  0x92   : > { %p1740_p10 = pnand %p1739_p5, %p1733_p4 }
  0x94   : > { %1743 = shalt.err (!%p1740_p10)
}
  0x95   : > { %1490 = dma.hbm_to_vmem [thread:$0]  (!%p2068_p6), %s2489_s7, 256, %s447_s22, [#allocation11], %s1933_s12, %s1933_s12, %s1934_s13  }
  0x96   : > { %s1937_s2 = smov [#allocation15]   ;;  %s1744_s27 = scalar_lea.hbm %s2492_s10, 256 }
  0x97   : > { %s475_s19 = sshll.u32 %s1937_s2, 4  ;;  %p1745_p1 = scmp.ne.s32.totalorder %s2492_s10, %s1744_s27  ;;  %s476_s19 = int_to_ptr.vmem [resolvable:$true] %s475_s19 }
  0x98   : > { %p1751_p12 = scmp.lt.u32.totalorder %s1744_s27, %s2492_s10 }
  0x99   : > { %p1747_p3 = pnand %p1745_p1, %p2084_p8 }
  0x9b   : > { %p1748_p11 = pneg %p1747_p3 }
  0x9d   : > { %p1753_p13 = pnand %p1751_p12, %p1748_p11 }
  0x9f   : > { %1756 = shalt.err (!%p1753_p13)
}
  0xa0   : > { %s1757_s22 = scalar_lea.vmem %s476_s19, 256  ;;  %p1765_p7 = scmp.lt.s32.totalorder %s476_s19, %s476_s19 }
  0xa1   : > { %p1758_p0 = scmp.ne.s32.totalorder %s476_s19, %s1757_s22  ;;  %p1766_p9 = scmp.lt.s32.totalorder %s1757_s22, %s1757_s22 }
  0xa3   : > { %p1760_p2 = pnand %p1758_p0, %p2084_p8  ;;  %p1767_p5 = por %p1766_p9, %p1765_p7 }
  0xa5   : > { %p1761_p4 = pneg %p1760_p2 }
  0xa7   : > { %p1768_p10 = pnand %p1767_p5, %p1761_p4 }
  0xa9   : > { %1771 = shalt.err (!%p1768_p10)
}
  0xaa   : > { %1496 = dma.hbm_to_vmem [thread:$0]  (!%p2068_p6), %s2492_s10, 256, %s476_s19, [#allocation14], %s1933_s12, %s1933_s12, %s1934_s13  }
  0xab   : > { %s1318_s14 = sadd.s32 4294967294, %s1928_s18   ;;  %s49_s24 = sadd.s32 1, %s1924_s17 }
  0xac   : > { %p51_p8 = scmp.ge.s32.totalorder %s49_s24, 2  ;;  %s58_s1 = sadd.s32 1, %s1916_s15 }
  0xad   : > { %p65_p1 = scmp.ne.s32.totalorder %s1916_s15, %s1912_s30  ;;  %p66_p3 = scmp.eq.s32.totalorder %s1928_s18, 0 }
  0xae   : > { %s2552_s24 = smov (%p51_p8, %s49_s24), 0  ;;  %p71_p12 = scmp.ne.s32.totalorder %s1912_s30, %s1908_s29 }
  0xaf   : > { %p2222_p11 = por %p66_p3, %p65_p1  ;;  %s53_s12 = ssub.s32 %s1924_s17, %s2552_s24 }
  0xb0   : > { %s2525_s13 = sadd.s32 4294967295, %s1928_s18   ;;  %p56_p13 = scmp.eq.s32.totalorder %s53_s12, 0 }
  0xb1   : > { %p349_p6 = scmp.eq.s32.totalorder %s2525_s13, 1  ;;  %p2526_p0 = scmp.ne.s32.totalorder %s2518_s20, 0 }
  0xb2   : > { %p355_p7 = scmp.eq.s32.totalorder %s1318_s14, 1  ;;  %p1514_p5 = scmp.lt.s32.totalorder %s1928_s18, 2 }
  0xb3   : > { %p2234_p2 = por %p2526_p0, %p71_p12  ;;  %p2238_p4 = por %p349_p6, %p65_p1 }
  0xb4   : > { %s2243_s25 = scalar_select %p56_p13, %s1916_s15, %s58_s1  }
  0xb5   : > { %s2528_s3 = scalar_select %p2238_p4, 1, 0 }
  0xb6   : > { %p2245_p9 = por %p355_p7, %p71_p12  ;;  %s495_s11 = sand.u32 1, %s1916_s15  }
  0xb7   : > { %s1328_s23 = sshll.u32 %s1924_s17, 7  ;;  %s1327_s9 = sshll.u32 %s495_s11, 3 }
  0xb8   : > { %s2529_s27 = scalar_select %p2245_p9, 1, 0 }
  0xb9   : > { %s2530_s0 = sld [smem:[#allocation26_spill]]  ;;  %s499_s16 = scalar_lea.vmem [#allocation4], %s1327_s9 }
  0xba   : > { %s507_s14 = sshll.u32 %s499_s16, 4  ;;  %p2259_p10 = pnand %p1514_p5, %p2222_p11  ;;  %s2263_s14 = int_to_ptr.vmem [resolvable:$true] %s507_s14 }
  0xbb   : > { %s496_s12 = scalar_lea.sflag [#allocation5], %s495_s11 }
  0xbc   : > { %p1774_p1 = pneg %p2259_p10 }
  0xbf   : > { %s2255_s28 = scalar_lea.hbm %s2530_s0, %s1328_s23  ;;  %s1777_s2 = scalar_lea.hbm %s2530_s0, 256 }
  0xc0   : > { %s1772_s13 = scalar_lea.hbm %s2255_s28, 128  ;;  %p1778_p11 = scmp.lt.u32.totalorder %s2255_s28, %s2530_s0 }
  0xc1   : > { %p1773_p8 = scmp.ne.s32.totalorder %s2255_s28, %s1772_s13  ;;  %p1779_p6 = scmp.lt.u32.totalorder %s1777_s2, %s1772_s13 }
  0xc2   : > { %p1781_p0 = scmp.lt.u32.totalorder %s1772_s13, %s2255_s28 }
  0xc3   : > { %p1775_p3 = pnand %p1774_p1, %p1773_p8  ;;  %p1780_p13 = por %p1779_p6, %p1778_p11 }
  0xc5   : > { %p1776_p12 = pneg %p1775_p3  ;;  %p1782_p7 = por %p1781_p0, %p1780_p13 }
  0xc7   : > { %p1783_p5 = pnand %p1782_p7, %p1776_p12 }
  0xc9   : > { %1786 = shalt.err (!%p1783_p5)
}
  0xca   : > { %s1787_s11 = scalar_lea.vmem %s2263_s14, 128  ;;  %s1938_s16 = smov [#allocation4]  }
  0xcb   : > { %p1788_p8 = scmp.ne.s32.totalorder %s2263_s14, %s1787_s11  ;;  %s1792_s23 = sshll.u32 %s1938_s16, 4  ;;  %s1793_s23 = int_to_ptr.vmem [resolvable:$false] %s1792_s23 }
  0xcc   : > { %s1794_s9 = scalar_lea.vmem %s1793_s23, 256  ;;  %p1795_p4 = scmp.lt.s32.totalorder %s2263_s14, %s1793_s23 }
  0xcd   : > { %p1790_p3 = pnand %p1788_p8, %p1774_p1  ;;  %p1796_p11 = scmp.lt.s32.totalorder %s1794_s9, %s1787_s11 }
  0xcf   : > { %p1791_p9 = pneg %p1790_p3  ;;  %p1797_p6 = por %p1796_p11, %p1795_p4 }
  0xd1   : > { %p1798_p13 = pnand %p1797_p6, %p1791_p9 }
  0xd3   : > { %1801 = shalt.err (!%p1798_p13)
}
  0xd4   : > { %1500 = dma.hbm_to_vmem [thread:$0]  (!%p2259_p10), %s2255_s28, 128, %s2263_s14, %s496_s12  }
  0xd5   : > { %p2532_p12 = scmp.ne.s32.totalorder %s2519_s21, 0 }
  0xd6   : > { %s2293_s13 = sand.u32 (!%p2532_p12), 1, %s1912_s30  }
  0xd7   : > { %516 = sbr.rel (%p2532_p12) target bundleno = 1481 (0x5c9), region = 72  ;;  %s2296_s2 = sshll.u32 (!%p2532_p12), %s2293_s13, 3 }
  0xd8   : > { %s519_s26 = scalar_lea.sflag (!%p2532_p12), [#allocation5], %s2293_s13  ;;  %s522_s22 = scalar_lea.vmem (!%p2532_p12), [#allocation4], %s2296_s2 }
  0xde   : > { %1883 = dma.done.wait (%p2234_p2), %s519_s26, 128  }
  0xdf   : > { %1885 = vsyncadd (%p2234_p2), %s519_s26, 4294967168  ;;  %p2533_p4 = scmp.ne.s32.totalorder %s2518_s20, 0 }
  0xe1   : > { %1887 = dma.done.wait (%p2533_p4), [#allocation8], 272  }
  0xe2   : > { %1889 = vsyncadd (%p2533_p4), [#allocation8], 4294967024 }
  0xe3   : > { %1891 = dma.done.wait (%p2533_p4), [#allocation11], 272  }
  0xe4   : > { %1893 = vsyncadd (%p2533_p4), [#allocation11], 4294967024 }
  0xe5   : > { %1895 = dma.done.wait (%p2533_p4), [#allocation14], 512  }
  0xe6   : > { %1897 = vsyncadd (%p2533_p4), [#allocation14], 4294966784  ;;  %v603_v0 = vlaneseq  ;;  %v1939_v1 = vmov 0.0   ;;  %vm1940_vm0 = vmmov 0   ;;  %vm601_vm1 = vcmask 253952   ;;  %v2324_v6 = vld [vmem:[%s522_s22] sm:$0xff] }
  0xe7   : > { %1394 = vmatprep.subr.bf16.mxu0 %v1939_v1  ;;  %1396 = vmatprep.mubr.msk.bf16.mxu0 %vm1940_vm0, %v1939_v1  ;;  %602 = vst.msk [vmem:[#allocation2] sm:$0x1] %vm601_vm1, %v1939_v1  ;;  %vm611_vm3 = vcmask 60416   ;;  %vm627_vm4 = vcmask 1043456   ;;  %v2328_v7 = vpack.c.bf16 %v2324_v6, %v2324_v6  ;;  %vm623_vm5 = vcmask 64512   ;;  %v1580_v26 = vld [vmem:[#allocation7] sm:$0xff]  }
  0xe8   : > { %v604_v2 = vshrl.u32 %v603_v0, 7  ;;  %v606_v3 = vand.u32 127, %v603_v0  ;;  %1400 = vmatprep.subr.bf16.mxu1 %v1939_v1  ;;  %1404 = vmatprep.mubr.msk.bf16.mxu1 %vm1940_vm0, %v1939_v1  ;;  %vm671_vm6 = vcmask 261127   ;;  %vm683_vm7 = vcmask 261120   ;;  %v1581_v27 = vld [vmem:[#allocation7 + $0x8] sm:$0xff]   ;;  %s2534_s14 = sld [smem:[#allocation27_spill]] }
  0xe9   : > { %v629_v8 = vsel %vm627_vm4, %v2328_v7, 0  ;;  %1401 = vmatpush3.bf16.msra.mxu1 %v1580_v26  ;;  %v1582_v28 = vld [vmem:[%s2487_s5] sm:$0xff]   ;;  %s2535_s11 = sld [smem:[#allocation28_spill]]  ;;  %v1583_v39 = vld [vmem:[%s2487_s5 + $0x8] sm:$0xff]   ;;  %v1586_v50 = vld [vmem:[#allocation12 + $0x8] sm:$0xff]   ;;  %s2536_s22 = sld [smem:[#allocation31_spill]] }
  0xea   : > { %vm607_vm2 = vcmp.le.s32.totalorder %v606_v3, %v604_v2  ;;  %1395 = vmatpush3.bf16.msra.mxu0 %v629_v8  ;;  %v678_v10 = vadd.s32 1, %v604_v2  ;;  %1402 = vmatprep.subr.bf16.mxu1 %v1939_v1  ;;  %v1585_v40 = vld [vmem:[#allocation13] sm:$0xff]   ;;  %v1344_v41 = vld [vmem:[#allocation9] ss:$0 sm:$0xff]  ;;  %v1584_v48 = vld [vmem:[#allocation12] sm:$0xff]   ;;  %s595_s19 = scalar_lea.vmem [#allocation17], %s2296_s2 }
  0xeb   : > { %v1339_v4 = vsel %vm607_vm2, 1.0, %v1939_v1  ;;  %1408 = vmatprep.subr.bf16.mxu0 %v1939_v1  ;;  %v1587_v51 = vld [vmem:[#allocation13 + $0x8] sm:$0xff]   ;;  %v1589_v61 = vld [vmem:[#allocation15] sm:$0xff]   ;;  %s2537_s28 = sld [smem:[#allocation25_spill]]  ;;  %v1591_v63 = vld [vmem:[#allocation15 + $0x8] sm:$0xff]   ;;  %s1147_s23 = sshll.u32 %s595_s19, 4  ;;  %s1148_s23 = int_to_ptr.vmem [resolvable:$true] %s1147_s23 }
  0xec   : > { %v610_v5 = vpack.c.bf16 %v1339_v4, %v1339_v4  ;;  %v679_v11 = vcvt.s32.f32 %v678_v10  ;;  %v1348_v54 = vld [vmem:[#allocation10] ss:$0 sm:$0xff]  ;;  %s1119_s9 = scalar_lea.sflag [#allocation18], %s2293_s13  ;;  %s1802_s26 = scalar_lea.vmem %s1148_s23, 128 }
  0xed   : > { %1403 = vmatpush3.bf16.msra.mxu1 %v1581_v27  ;;  %p1803_p2 = scmp.ne.s32.totalorder %s1148_s23, %s1802_s26  ;;  %p2539_p9 = scmp.ne.s32.totalorder %s2528_s3, 0 }
  0xee   : > { %612 = vst.msk [vmem:[#allocation3] sm:$0xf] %vm611_vm3, %v610_v5  ;;  %1592 = vrcp.f32 %v679_v11  ;;  %v1340_v12 = vld [vmem:[#allocation2] ss:$0 sm:$0xff]  ;;  %1416 = vmatprep.subr.bf16.mxu1 %v1939_v1  ;;  %s1941_s20 = smov [#allocation17]  }
  0xef   : > { %v1342_v33 = vld [vmem:[%s2534_s14] ss:$0 sm:$0xff]  ;;  %v1590_v53 = vld [vmem:[%s2536_s22 + $0x8] sm:$0xff]   ;;  %p1804_p10 = pnand %p1803_p2, %p2539_p9  ;;  %s1806_s21 = sshll.u32 %s1941_s20, 4  ;;  %s1807_s21 = int_to_ptr.vmem [resolvable:$false] %s1806_s21 }
  0xf0   : > { %v1343_v35 = vld [vmem:[%s2535_s11] ss:$0 sm:$0xff]  ;;  %s2538_s11 = sld [smem:[#allocation35_spill]]  ;;  %s1808_s0 = scalar_lea.vmem %s1807_s21, 256 }
  0xf1   : > { %v1588_v52 = vld [vmem:[%s2536_s22] sm:$0xff]   ;;  %s2506_s14 = sshll.u32 %s2537_s28, 7  ;;  %p1805_p1 = pneg %p1804_p10 }
  0xf2   : > { %p1809_p0 = scmp.lt.s32.totalorder %s1148_s23, %s1807_s21  ;;  %p1810_p7 = scmp.lt.s32.totalorder %s1808_s0, %s1802_s26 }
  0xf4   : > { %p1811_p5 = por %p1810_p7, %p1809_p0 }
  0xf5   : > { %v615_v9 = vld [vmem:[#allocation3] sm:$0xf] }
  0xf6   : > { %1397 = vmatmul.mubr.msk.bf16.vlgmr.msra.gmra.mrb[0].mxu0 %vm623_vm5, %v615_v9  ;;  %s2398_s16 = scalar_lea.hbm %s2538_s11, %s2506_s14  ;;  %p1812_p8 = pnand %p1811_p5, %p1805_p1 }
  0xf7   : > { %1412 = vmatprep.mubr.msk.bf16.mxu0 %vm1940_vm0, %v1939_v1  ;;  %1409 = vmatpush3.bf16.msra.mxu0 %v1582_v28 }
  0xf8   : > { %v1593_v13 = vpop.eup %1592  ;;  %1410 = vmatprep.subr.bf16.mxu0 %v1939_v1 }
  0xfb   : > { %1411 = vmatpush3.bf16.msra.mxu0 %v1583_v39 }
  0xfc   : > { %1424 = vmatprep.subr.bf16.mxu0 %v1939_v1 }
 0x1c9   : > { %v665_v14 = vpop.f32.mrb[0].mxu0 }
 0x1ca   : > { %v666_v15 = vadd.f32 %v1340_v12, %v665_v14  ;;  %v1398_v16 = vpop.f32.mrb[1].mxu0 }
 0x1cb   : > { %v668_v17 = vpop.f32.mrb[2].mxu0 }
 0x1cc   : > { %672 = vst.msk [vmem:[#allocation2 - $0x7] sm:$0x80] %vm671_vm6, %v666_v15  ;;  %v2334_v18 = vmul.f32 %v1593_v13, %v666_v15  ;;  %v1399_v19 = vpop.f32.mrb[3].mxu0 }
 0x1ce   : > { %v684_v20 = vsel %vm683_vm7, %v2334_v18, 0.0 }
 0x1cf   : > { %685 = vadd.xlane.f32.xlu0 %v684_v20 }
 0x25c   : > { %v686_v21 = vpop.xlane.xlu0 %685 }
 0x25d   : > { %v688_v22 = vmul.f32 0.03125, %v686_v21 }
 0x25f   : > { %v689_v23 = vsub.f32 %v2334_v18, %v688_v22 }
 0x261   : > { %v690_v24 = vmul.f32 %v689_v23, %v689_v23 }
 0x263   : > { %v691_v25 = vsel %vm683_vm7, %v690_v24, 0.0 }
 0x264   : > { %692 = vadd.xlane.f32.xlu0 %v691_v25 }
 0x2f1   : > { %v693_v29 = vpop.xlane.xlu0 %692 }
 0x2f2   : > { %v694_v30 = vmul.f32 0.03125, %v693_v29 }
 0x2f4   : > { %v695_v31 = vadd.f32 1e-06, %v694_v30 }
 0x2f6   : > { %1594 = vrsqrt.f32 %v695_v31 }
 0x300   : > { %v1595_v32 = vpop.eup %1594 }
 0x301   : > { %v697_v34 = vmul.f32 %v1595_v32, %v689_v23 }
 0x303   : > { %v705_v36 = vmul.f32 %v1342_v33, %v697_v34 }
 0x305   : > { %v713_v37 = vadd.f32 %v1343_v35, %v705_v36 }
 0x307   : > { %v714_v38 = vpack.c.bf16 %v713_v37, %v713_v37 }
 0x309   : > { %1405 = vmatmul.mubr.msk.bf16.vlgmr.msra.gmra.mrb[0].mxu1 %vm683_vm7, %v714_v38 }
 0x30a   : > { %1420 = vmatprep.mubr.msk.bf16.mxu1 %vm1940_vm0, %v1939_v1  ;;  %1417 = vmatpush3.bf16.msra.mxu1 %v1585_v40 }
 0x30b   : > { %1418 = vmatprep.subr.bf16.mxu1 %v1939_v1 }
 0x30e   : > { %1419 = vmatpush3.bf16.msra.mxu1 %v1587_v51 }
 0x30f   : > { %1432 = vmatprep.subr.bf16.mxu1 %v1939_v1 }
 0x3dc   : > { %v775_v42 = vpop.f32.mrb[0].mxu1 }
 0x3dd   : > { %v776_v43 = vadd.f32 %v1344_v41, %v775_v42  ;;  %v1406_v44 = vpop.f32.mrb[1].mxu1 }
 0x3de   : > { %v778_v45 = vpop.f32.mrb[2].mxu1 }
 0x3df   : > { %v781_v46 = vmax.f32 %v776_v43, 0.0  ;;  %v1407_v47 = vpop.f32.mrb[3].mxu1 }
 0x3e1   : > { %v782_v49 = vpack.c.bf16 %v781_v46, %v781_v46 }
 0x3e3   : > { %1413 = vmatmul.mubr.msk.bf16.vlgmr.msra.gmra.mrb[4].mxu0 %vm683_vm7, %v782_v49 }
 0x3e4   : > { %1425 = vmatpush3.bf16.msra.mxu0 %v1584_v48  ;;  %1428 = vmatprep.mubr.msk.bf16.mxu0 %vm1940_vm0, %v1939_v1 }
 0x3e5   : > { %1426 = vmatprep.subr.bf16.mxu0 %v1939_v1 }
 0x3e8   : > { %1427 = vmatpush3.bf16.msra.mxu0 %v1586_v50 }
 0x3e9   : > { %1440 = vmatprep.subr.bf16.mxu0 %v1939_v1 }
 0x3eb   : > { %1429 = vmatmul.mubr.msk.bf16.vlgmr.msra.gmra.mrb[8].mxu0 %vm683_vm7, %v2328_v7 }
 0x3ec   : > { %1441 = vmatpush3.bf16.msra.mxu0 %v1588_v52  ;;  %1444 = vmatprep.mubr.msk.bf16.mxu0 %vm1940_vm0, %v1939_v1 }
 0x3ed   : > { %1442 = vmatprep.subr.bf16.mxu0 %v1939_v1 }
 0x3f0   : > { %1443 = vmatpush3.bf16.msra.mxu0 %v1590_v53 }
 0x3f3   : > { %1445 = vmatmul.mubr.msk.bf16.vlgmr.msra.gmra.mrb[12].mxu0 %vm683_vm7, %v2328_v7 }
 0x4b6   : > { %v843_v55 = vpop.f32.mrb[4].mxu0 }
 0x4b7   : > { %v844_v56 = vadd.f32 %v1348_v54, %v843_v55  ;;  %v1414_v57 = vpop.f32.mrb[5].mxu0 }
 0x4b8   : > { %v846_v58 = vpop.f32.mrb[6].mxu0 }
 0x4b9   : > { %v2380_v59 = vadd.f32 %v844_v56, %v2334_v18  ;;  %v1415_v60 = vpop.f32.mrb[7].mxu0 }
 0x4bb   : > { %v850_v62 = vpack.c.bf16 %v2380_v59, %v2380_v59  ;;  %1112 = vst.msk [vmem:[%s595_s19] sm:$0xff] %vm683_vm7, %v2380_v59 }
 0x4bd   : > { %1421 = vmatmul.mubr.msk.bf16.vlgmr.msra.gmra.mrb[4].mxu1 %vm683_vm7, %v850_v62 }
 0x4be   : > { %1433 = vmatpush3.bf16.msra.mxu1 %v1589_v61  ;;  %1436 = vmatprep.mubr.msk.bf16.mxu1 %vm1940_vm0, %v1939_v1  ;;  %v962_v0 = vpop.f32.mrb[8].mxu0 }
 0x4bf   : > { %1434 = vmatprep.subr.bf16.mxu1 %v1939_v1  ;;  %v1430_v2 = vpop.f32.mrb[9].mxu0 }
 0x4c0   : > { %v965_v3 = vpop.f32.mrb[10].mxu0 }
 0x4c1   : > { %v1431_v4 = vpop.f32.mrb[11].mxu0 }
 0x4c2   : > { %1435 = vmatpush3.bf16.msra.mxu1 %v1591_v63 }
 0x4c5   : > { %1437 = vmatmul.mubr.msk.bf16.vlgmr.msra.gmra.mrb[8].mxu1 %vm683_vm7, %v850_v62 }
 0x4c6   : > { %v1082_v5 = vpop.f32.mrb[12].mxu0 }
 0x4c7   : > { %v1446_v7 = vpop.f32.mrb[13].mxu0 }
 0x4c8   : > { %v1085_v8 = vpop.f32.mrb[14].mxu0 }
 0x4c9   : > { %v1447_v9 = vpop.f32.mrb[15].mxu0 }
 0x4ca   : > { %1815 = shalt.err (!%p1812_p8)
}
 0x4cb   : > { %s1816_s19 = scalar_lea.hbm %s2398_s16, 128  ;;  %s1820_s20 = scalar_lea.hbm %s2538_s11, 256 }
 0x4cc   : > { %p1817_p3 = scmp.ne.s32.totalorder %s2398_s16, %s1816_s19  ;;  %p1821_p13 = scmp.lt.u32.totalorder %s2398_s16, %s2538_s11 }
 0x4cd   : > { %p1822_p12 = scmp.lt.u32.totalorder %s1820_s20, %s1816_s19  ;;  %p1824_p2 = scmp.lt.u32.totalorder %s1816_s19, %s2398_s16 }
 0x4ce   : > { %p1818_p11 = pnand %p1817_p3, %p2539_p9 }
 0x4cf   : > { %p1823_p4 = por %p1822_p12, %p1821_p13 }
 0x4d0   : > { %p1819_p6 = pneg %p1818_p11 }
 0x4d1   : > { %p1825_p10 = por %p1824_p2, %p1823_p4 }
 0x4d3   : > { %p1826_p1 = pnand %p1825_p10, %p1819_p6 }
 0x4d5   : > { %1829 = shalt.err (!%p1826_p1)
}
 0x4d6   : > { %1475 = dma.vmem_to_hbm [thread:$0]  (%p2539_p9), %s1148_s23, 128, %s2398_s16, %s1119_s9  }
 0x4d7   : > { %s2540_s4 = sld [smem:[#allocation32_spill]]  ;;  %s2541_s1 = sld [smem:[#allocation33_spill]] }
 0x4d8   : > { %s2542_s23 = sshll.u32 %s2537_s28, 7  ;;  %s2543_s20 = sld [smem:[#allocation34_spill]] }
 0x4d9   : > { %s1942_s26 = smov [#allocation16]  }
 0x4da   : > { %s1834_s28 = sshll.u32 %s1942_s26, 4  ;;  %s1835_s28 = int_to_ptr.vmem [resolvable:$false] %s1834_s28 }
 0x4db   : > { %s1836_s14 = scalar_lea.vmem %s1835_s28, 256 }
 0x4dd   : > { %v1358_v10 = vld [vmem:[%s2540_s4] ss:$0 sm:$0xff]  ;;  %s588_s4 = scalar_lea.vmem [#allocation16], %s2296_s2  ;;  %s1114_s2 = scalar_lea.sflag [#allocation6], %s2293_s13 }
 0x4de   : > { %v1365_v18 = vld [vmem:[%s2541_s1] ss:$0 sm:$0xff]  ;;  %s1133_s16 = sshll.u32 %s588_s4, 4  ;;  %s2432_s21 = scalar_lea.hbm %s2543_s20, %s2542_s23  ;;  %s2434_s16 = int_to_ptr.vmem [resolvable:$true] %s1133_s16 }
 0x4df   : > { %s1830_s0 = scalar_lea.vmem %s2434_s16, 128  ;;  %p1837_p8 = scmp.lt.s32.totalorder %s2434_s16, %s1835_s28 }
 0x4e0   : > { %p1831_p0 = scmp.ne.s32.totalorder %s2434_s16, %s1830_s0  ;;  %p1838_p3 = scmp.lt.s32.totalorder %s1836_s14, %s1830_s0 }
 0x4e2   : > { %p1832_p7 = pnand %p1831_p0, %p2539_p9  ;;  %p1839_p11 = por %p1838_p3, %p1837_p8 }
 0x4e4   : > { %p1833_p5 = pneg %p1832_p7 }
 0x4e6   : > { %p1840_p6 = pnand %p1839_p11, %p1833_p5 }
 0x590   : > { %v908_v1 = vpop.f32.mrb[4].mxu1 }
 0x591   : > { %v963_v11 = vadd.f32 %v962_v0, %v908_v1  ;;  %v1422_v12 = vpop.f32.mrb[5].mxu1 }
 0x592   : > { %v911_v13 = vpop.f32.mrb[6].mxu1 }
 0x593   : > { %v975_v14 = vadd.f32 %v1358_v10, %v963_v11  ;;  %v1423_v15 = vpop.f32.mrb[7].mxu1 }
 0x595   : > { %v1366_v16 = vmul.f32 -1.442695, %v975_v14 }
 0x597   : > { %1596 = vpow2.f32 %v1366_v16 }
 0x598   : > { %v1030_v17 = vpop.f32.mrb[8].mxu1 }
 0x599   : > { %v1083_v19 = vadd.f32 %v1082_v5, %v1030_v17  ;;  %v1438_v20 = vpop.f32.mrb[9].mxu1 }
 0x59a   : > { %v1033_v21 = vpop.f32.mrb[10].mxu1 }
 0x59b   : > { %v1095_v22 = vadd.f32 %v1365_v18, %v1083_v19  ;;  %v1439_v23 = vpop.f32.mrb[11].mxu1 }
 0x59d   : > { %v1367_v24 = vmul.f32 -1.442695, %v1095_v22 }
 0x59f   : > { %1598 = vpow2.f32 %v1367_v24 }
 0x5a1   : > { %v1597_v25 = vpop.eup %1596 }
 0x5a2   : > { %v1099_v26 = vadd.f32 1.0, %v1597_v25 }
 0x5a4   : > { %1600 = vrcp.f32 %v1099_v26 }
 0x5a9   : > { %v1599_v27 = vpop.eup %1598 }
 0x5aa   : > { %v1106_v28 = vadd.f32 1.0, %v1599_v27 }
 0x5ac   : > { %1602 = vrcp.f32 %v1106_v28 }
 0x5ae   : > { %v1601_v29 = vpop.eup %1600 }
 0x5af   : > { %v1102_v31 = vmul.f32 %v1601_v29, %v2324_v6 }
 0x5b6   : > { %v1603_v30 = vpop.eup %1602 }
 0x5b7   : > { %v1109_v32 = vmul.f32 %v1603_v30, %v2380_v59 }
 0x5b9   : > { %v1110_v33 = vadd.f32 %v1109_v32, %v1102_v31 }
 0x5bb   : > { %1111 = vst.msk [vmem:[%s588_s4] sm:$0xff] %vm683_vm7, %v1110_v33 }
 0x5bc   : > { %1843 = shalt.err (!%p1840_p6)
}
 0x5bd   : > { %s1844_s13 = scalar_lea.hbm %s2432_s21, 128  ;;  %s1848_s4 = scalar_lea.hbm %s2543_s20, 256 }
 0x5be   : > { %p1845_p13 = scmp.ne.s32.totalorder %s2432_s21, %s1844_s13  ;;  %p1849_p2 = scmp.lt.u32.totalorder %s2432_s21, %s2543_s20 }
 0x5bf   : > { %p1850_p10 = scmp.lt.u32.totalorder %s1848_s4, %s1844_s13  ;;  %p1852_p0 = scmp.lt.u32.totalorder %s1844_s13, %s2432_s21 }
 0x5c0   : > { %p1846_p12 = pnand %p1845_p13, %p2539_p9 }
 0x5c1   : > { %p1851_p1 = por %p1850_p10, %p1849_p2 }
 0x5c2   : > { %p1847_p4 = pneg %p1846_p12 }
 0x5c3   : > { %p1853_p7 = por %p1852_p0, %p1851_p1 }
 0x5c5   : > { %p1854_p5 = pnand %p1853_p7, %p1847_p4 }
 0x5c7   : > { %1857 = shalt.err (!%p1854_p5)
}
 0x5c8   : > { %1474 = dma.vmem_to_hbm [thread:$0]  (%p2539_p9), %s2434_s16, 128, %s2432_s21, %s1114_s2  }
 0x5c9 PF: > { %s1159_s12 = sand.u32 1, %s1908_s29   ;;  %p2544_p8 = scmp.ne.s32.totalorder %s2529_s27, 0 }
 0x5ca   : > { %p2545_p3 = scmp.ge.s32.totalorder %s1928_s18, 2  ;;  %s1160_s0 = scalar_lea.sflag [#allocation6], %s1159_s12 }
 0x5cc   : > { %p1502_p11 = pnand %p2545_p3, %p2544_p8 }
 0x5ce   : > { %1899 = dma.done.wait (!%p1502_p11), %s1160_s0, 128  }
 0x5cf   : > { %1901 = vsyncadd (!%p1502_p11), %s1160_s0, 4294967168  ;;  %s1169_s26 = scalar_lea.sflag [#allocation18], %s1159_s12 }
 0x5d0   : > { %1903 = dma.done.wait (!%p1502_p11), %s1169_s26, 128  }
 0x5d1   : > { %1905 = vsyncadd (!%p1502_p11), %s1169_s26, 4294967168  ;;  %s37_s18 = sadd.s32 1, %s1928_s18   ;;  %s2546_s29 = smov %s1912_s30 }
 0x5d2   : > { %p34_p6 = scmp.ge.s32.totalorder %s37_s18, 4   ;;  %s2547_s30 = smov %s1916_s15 }
 0x5d3   : > { %s2548_s15 = smov %s2243_s25  ;;  %s2549_s16 = smov %s1924_s17 }
 0x5d4   : > { %s2550_s17 = smov %s2552_s24  ;;  %36 = sbr.rel (!%p34_p6) target bundleno = 22 (0x16), region = 162 }
 0x5db   :  { %1174 = vsyncpa [#allocation5], 1 }
 0x5dc   :  { %1176 = vsyncpa [#allocation5 + $0x1], 1 }
 0x5dd   :  { %1177 = vsyncpa [#allocation8], 1 }
 0x5de   :  { %1178 = vsyncpa [#allocation11], 1 }
 0x5df   :  { %1179 = vsyncpa [#allocation14], 1 }
 0x5e0   :  { %1180 = vsyncpa [#allocation6], 1 }
 0x5e1   :  { %1182 = vsyncpa [#allocation6 + $0x1], 1 }
 0x5e2   :  { %1183 = vsyncpa [#allocation18], 1 }
 0x5e3   :  { %1185 = vsyncpa [#allocation18 + $0x1], 1 }

</bundles_post_ra>
